<compile_context>
chip_gen: v7x
topology: tpu7x:2x2x1
jax: 0.10.0
libtpu: 0.0.40
codegen_flags: <defaults>
</compile_context>

<pallas_src>
from functools import partial

import numpy as np
import jax
import jax.numpy as jnp
from jax.experimental import pallas as pl
from jax.experimental.pallas import tpu as pltpu


def _pad_to(n, m):
    return ((n + m - 1) // m) * m


def _cdiv(a, b):
    return -(-a // b)


# ----------------------------- Pallas kernel ------------------------------ #

def _encoder_kernel(cat_ref,
                    w1_ref, b1_ref,
                    w2_ref, b2_ref,
                    w3_ref, b3_ref,
                    wp_ref, bp_ref,
                    out_ref):
    def leaky(x):
        # LeakyReLU(0.1) as a single max (cheaper than compare+select).
        return jnp.maximum(x, 0.1 * x)

    def dense(x, w_ref, b_ref):
        # bf16 operands, f32 accumulation on the MXU.
        return jnp.dot(x.astype(w_ref.dtype), w_ref[...],
                       preferred_element_type=jnp.float32) + b_ref[...]

    h = leaky(dense(cat_ref[...], w1_ref, b1_ref))   # (tb, 256)
    h = leaky(dense(h, w2_ref, b2_ref))              # (tb, 128)
    h = leaky(dense(h, w3_ref, b3_ref))              # (tb, 128)
    o = dense(h, wp_ref, bp_ref)                     # (tb, embed_size)

    # Row-wise L2 normalization (matches l2norm; tiny eps avoids NaN on an
    # all-zero row, which PyTorch's version would produce).
    sumsq = jnp.sum(o * o, axis=1, keepdims=True)
    out_ref[...] = o * jax.lax.rsqrt(sumsq + 1e-12)


# ------------------------------- wrapper ----------------------------------- #

def mlp_encoder_forward(cat_feat, params, *, tile_b=2048):
    """cat_feat: (B, 4*word_dim) bf16 pre-concatenated features."""
    (w1, b1), (w2, b2), (w3, b3), (wp, bp) = params
    B, d_in = cat_feat.shape
    e = wp.shape[1]                      # true embed_size (no output padding)

    # Adaptive batch tiling.
    align = 16                           # bf16 sublane packing
    b_aligned = _pad_to(B, align)
    g = max(1, _cdiv(b_aligned, tile_b))
    # v7x: two TensorCores -> make sure the "parallel" batch axis has >= 2
    # steps whenever the batch allows it (harmless on single-TC v5e/v6e).
    if g == 1 and b_aligned >= 2 * align:
        g = 2
    tb = _pad_to(_cdiv(b_aligned, g), align)
    b_pad = tb * g

    if b_pad != B:
        cat_feat = jnp.pad(cat_feat, ((0, b_pad - B), (0, 0)))

    def row_spec(cols):
        return pl.BlockSpec((tb, cols), lambda i: (i, 0))

    def const_spec(shape):
        # Weights / biases: same block every grid step -> stay VMEM-resident.
        return pl.BlockSpec(shape, lambda i: (0, 0))

    out_padded = pl.pallas_call(
        _encoder_kernel,
        out_shape=jax.ShapeDtypeStruct((b_pad, e), jnp.float32),
        grid=(g,),
        in_specs=[row_spec(d_in),
                  const_spec(w1.shape), const_spec(b1.shape),
                  const_spec(w2.shape), const_spec(b2.shape),
                  const_spec(w3.shape), const_spec(b3.shape),
                  const_spec(wp.shape), const_spec(bp.shape)],
        out_specs=row_spec(e),
        compiler_params=pltpu.CompilerParams(
            dimension_semantics=("parallel",),
            vmem_limit_bytes=48 * 1024 * 1024),
    )(cat_feat, w1, b1, w2, b2, w3, b3, wp, bp)

    # Only a leading-dim row trim remains (and only when batch padding was
    # actually needed); no column slice / extra HBM pass on the full output.
    return out_padded if b_pad == B else out_padded[:B]


@partial(jax.jit, static_argnums=(4,))
def mlp_encoder_text_alt(x, lengths, embed_w, params, embed_size):
    """Full forward pass.  x: (B, 2) int32 token ids.  `lengths` unused
    (kept to match the PyTorch signature)."""
    del lengths, embed_size
    # Embedding gather + feature construction fused in XLA, feeding the
    # kernel a single lane-dense (B, 4*word_dim) bf16 input.
    att = jnp.take(embed_w, x[:, 0], axis=0)
    obj = jnp.take(embed_w, x[:, 1], axis=0)
    cat = jnp.concatenate([att, obj, att * obj, jnp.abs(att - obj)], axis=1)
    return mlp_encoder_forward(cat.astype(jnp.bfloat16), params)


# ------------------------- parameter construction ------------------------- #

def xavier_linear(key, fan_in, fan_out, in_pad=None, out_pad=None,
                  w_dtype=jnp.bfloat16):
    """Matches init_weights: uniform(-r, r), r = sqrt(6)/sqrt(in+out), bias=0.
    The real (fan_in, fan_out) block is embedded in a zero-padded
    (in_pad, out_pad) matrix; padding is numerically exact (zero rows/cols,
    leaky(0) = 0)."""
    in_pad = fan_in if in_pad is None else in_pad
    out_pad = fan_out if out_pad is None else out_pad
    r = np.sqrt(6.0) / np.sqrt(fan_in + fan_out)
    w = jax.random.uniform(key, (fan_in, fan_out),
                           minval=-r, maxval=r, dtype=jnp.float32)
    w_full = jnp.zeros((in_pad, out_pad), jnp.float32).at[:fan_in, :fan_out].set(w)
    b_full = jnp.zeros((1, out_pad), jnp.float32)
    return w_full.astype(w_dtype), b_full


def make_params(key, vocab_size, word_dim, embed_size, w_dtype=jnp.bfloat16):
    k_emb, k1, k2, k3, kp = jax.random.split(key, 5)
    embed_w = jax.random.uniform(k_emb, (vocab_size, word_dim),
                                 minval=-0.1, maxval=0.1, dtype=jnp.float32)
    d_in = 4 * word_dim                                   # 128 -> lane-dense
    h1, h2, h3 = 5 * word_dim, 3 * word_dim, 2 * word_dim
    h1p, h2p, h3p = _pad_to(h1, 128), _pad_to(h2, 128), _pad_to(h3, 128)
    layer1 = xavier_linear(k1, d_in, h1, in_pad=d_in, out_pad=h1p, w_dtype=w_dtype)
    layer2 = xavier_linear(k2, h1, h2, in_pad=h1p, out_pad=h2p, w_dtype=w_dtype)
    layer3 = xavier_linear(k3, h2, h3, in_pad=h2p, out_pad=h3p, w_dtype=w_dtype)
    # Final projection: padded on the input side only; output stays at the
    # true embed_size so the kernel writes exactly what the caller needs.
    projup = xavier_linear(kp, h3, embed_size, in_pad=h3p, out_pad=embed_size,
                           w_dtype=w_dtype)
    return embed_w, (layer1, layer2, layer3, projup)


# ----------------------------- pure-JAX ref -------------------------------- #

def _reference_forward(x, embed_w, params):
    (w1, b1), (w2, b2), (w3, b3), (wp, bp) = params
    att = jnp.take(embed_w, x[:, 0], axis=0)
    obj = jnp.take(embed_w, x[:, 1], axis=0)
    cat = jnp.concatenate([att, obj, att * obj, jnp.abs(att - obj)], axis=1)

    def leaky(v):
        return jnp.where(v > 0, v, 0.1 * v)

    h = leaky(cat @ w1.astype(jnp.float32) + b1)
    h = leaky(h @ w2.astype(jnp.float32) + b2)
    h = leaky(h @ w3.astype(jnp.float32) + b3)
    o = h @ wp.astype(jnp.float32) + bp
    norm = jnp.sqrt(jnp.sum(o * o, axis=1, keepdims=True))
    return o / norm


# --------------------------------- main ----------------------------------- #

if __name__ == "__main__":
    vocab_size = 20
    word_dim = 32
    embed_size = 64
    batch = 8

    key = jax.random.PRNGKey(0)
    k_params, k_x = jax.random.split(key)

    embed_w, params = make_params(k_params, vocab_size, word_dim, embed_size)

    x = jax.random.randint(k_x, (batch, 2), 0, vocab_size, dtype=jnp.int32)
    lengths = jnp.full((batch,), 2, dtype=jnp.int32)

    out = mlp_encoder_text_alt(x, lengths, embed_w, params, embed_size)
    out = jax.block_until_ready(out)

    assert out.shape == (batch, embed_size)
    assert bool(jnp.all(jnp.isfinite(out)))

    # Relaxed tolerance: kernel matmuls run with bf16 operands (f32 accumulate)
    # and bf16 features.
    ref = _reference_forward(x, embed_w, params)
    assert bool(jnp.max(jnp.abs(out - ref)) < 5e-2)

    # Per-row L2 norm should be 1.
    assert bool(jnp.max(jnp.abs(jnp.sum(out * out, axis=1) - 1.0)) < 1e-3)

    print("KERNEL_OK")
</pallas_src>

<mosaic_0001>
module attributes {stable_mosaic.version = 11 : i64} {
  func.func @_encoder_kernel(%arg0: i32, %arg1: memref<16x128xbf16, #tpu.memory_space<vmem>>, %arg2: memref<128x256xbf16, #tpu.memory_space<vmem>>, %arg3: memref<1x256xf32, #tpu.memory_space<vmem>>, %arg4: memref<256x128xbf16, #tpu.memory_space<vmem>>, %arg5: memref<1x128xf32, #tpu.memory_space<vmem>>, %arg6: memref<128x128xbf16, #tpu.memory_space<vmem>>, %arg7: memref<1x128xf32, #tpu.memory_space<vmem>>, %arg8: memref<128x64xbf16, #tpu.memory_space<vmem>>, %arg9: memref<1x64xf32, #tpu.memory_space<vmem>>, %arg10: memref<16x64xf32, #tpu.memory_space<vmem>>) attributes {dimension_semantics = [#tpu.dimension_semantics<parallel>], iteration_bounds = array<i64: 1>, scalar_prefetch = 0 : i64, scratch_operands = 0 : i64, tpu.core_type = #tpu.core_type<tc>, window_params = [{transform_indices = @transform_0, window_bounds = array<i64: 16, 128>}, {pipeline_mode = #tpu.pipeline_mode<synchronous>, transform_indices = @transform_1, window_bounds = array<i64: 128, 256>}, {pipeline_mode = #tpu.pipeline_mode<synchronous>, transform_indices = @transform_2, window_bounds = array<i64: 1, 256>}, {pipeline_mode = #tpu.pipeline_mode<synchronous>, transform_indices = @transform_3, window_bounds = array<i64: 256, 128>}, {pipeline_mode = #tpu.pipeline_mode<synchronous>, transform_indices = @transform_4, window_bounds = array<i64: 1, 128>}, {pipeline_mode = #tpu.pipeline_mode<synchronous>, transform_indices = @transform_5, window_bounds = array<i64: 128, 128>}, {pipeline_mode = #tpu.pipeline_mode<synchronous>, transform_indices = @transform_6, window_bounds = array<i64: 1, 128>}, {pipeline_mode = #tpu.pipeline_mode<synchronous>, transform_indices = @transform_7, window_bounds = array<i64: 128, 64>}, {pipeline_mode = #tpu.pipeline_mode<synchronous>, transform_indices = @transform_8, window_bounds = array<i64: 1, 64>}, {transform_indices = @transform_9, window_bounds = array<i64: 16, 64>}]} {
    %c0 = arith.constant 0 : index
    %c0_0 = arith.constant 0 : index
    %0 = vector.load %arg1[%c0, %c0_0] : memref<16x128xbf16, #tpu.memory_space<vmem>>, vector<16x128xbf16>
    %c0_1 = arith.constant 0 : index
    %c0_2 = arith.constant 0 : index
    %1 = vector.load %arg2[%c0_1, %c0_2] : memref<128x256xbf16, #tpu.memory_space<vmem>>, vector<128x256xbf16>
    %cst = arith.constant dense<0.000000e+00> : vector<16x256xf32>
    %2 = tpu.matmul %0, %1, %cst {dimension_numbers = #tpu.dot_dimension_numbers<[1], [0], [0], [1], [0, 0, 1, 1], [], []>} : vector<16x128xbf16>, vector<128x256xbf16>, vector<16x256xf32> -> vector<16x256xf32>
    %c0_3 = arith.constant 0 : index
    %c0_4 = arith.constant 0 : index
    %3 = vector.load %arg3[%c0_3, %c0_4] : memref<1x256xf32, #tpu.memory_space<vmem>>, vector<1x256xf32>
    %4 = vector.broadcast %3 : vector<1x256xf32> to vector<16x256xf32>
    %5 = arith.addf %2, %4 : vector<16x256xf32>
    %cst_5 = arith.constant 1.000000e-01 : f32
    %6 = vector.broadcast %cst_5 : f32 to vector<16x256xf32>
    %7 = arith.mulf %6, %5 : vector<16x256xf32>
    %8 = arith.maximumf %5, %7 : vector<16x256xf32>
    %9 = arith.truncf %8 : vector<16x256xf32> to vector<16x256xbf16>
    %c0_6 = arith.constant 0 : index
    %c0_7 = arith.constant 0 : index
    %10 = vector.load %arg4[%c0_6, %c0_7] : memref<256x128xbf16, #tpu.memory_space<vmem>>, vector<256x128xbf16>
    %cst_8 = arith.constant dense<0.000000e+00> : vector<16x128xf32>
    %11 = tpu.matmul %9, %10, %cst_8 {dimension_numbers = #tpu.dot_dimension_numbers<[1], [0], [0], [1], [0, 0, 1, 1], [], []>} : vector<16x256xbf16>, vector<256x128xbf16>, vector<16x128xf32> -> vector<16x128xf32>
    %c0_9 = arith.constant 0 : index
    %c0_10 = arith.constant 0 : index
    %12 = vector.load %arg5[%c0_9, %c0_10] : memref<1x128xf32, #tpu.memory_space<vmem>>, vector<1x128xf32>
    %13 = vector.broadcast %12 : vector<1x128xf32> to vector<16x128xf32>
    %14 = arith.addf %11, %13 : vector<16x128xf32>
    %cst_11 = arith.constant 1.000000e-01 : f32
    %15 = vector.broadcast %cst_11 : f32 to vector<16x128xf32>
    %16 = arith.mulf %15, %14 : vector<16x128xf32>
    %17 = arith.maximumf %14, %16 : vector<16x128xf32>
    %18 = arith.truncf %17 : vector<16x128xf32> to vector<16x128xbf16>
    %c0_12 = arith.constant 0 : index
    %c0_13 = arith.constant 0 : index
    %19 = vector.load %arg6[%c0_12, %c0_13] : memref<128x128xbf16, #tpu.memory_space<vmem>>, vector<128x128xbf16>
    %cst_14 = arith.constant dense<0.000000e+00> : vector<16x128xf32>
    %20 = tpu.matmul %18, %19, %cst_14 {dimension_numbers = #tpu.dot_dimension_numbers<[1], [0], [0], [1], [0, 0, 1, 1], [], []>} : vector<16x128xbf16>, vector<128x128xbf16>, vector<16x128xf32> -> vector<16x128xf32>
    %c0_15 = arith.constant 0 : index
    %c0_16 = arith.constant 0 : index
    %21 = vector.load %arg7[%c0_15, %c0_16] : memref<1x128xf32, #tpu.memory_space<vmem>>, vector<1x128xf32>
    %22 = vector.broadcast %21 : vector<1x128xf32> to vector<16x128xf32>
    %23 = arith.addf %20, %22 : vector<16x128xf32>
    %cst_17 = arith.constant 1.000000e-01 : f32
    %24 = vector.broadcast %cst_17 : f32 to vector<16x128xf32>
    %25 = arith.mulf %24, %23 : vector<16x128xf32>
    %26 = arith.maximumf %23, %25 : vector<16x128xf32>
    %27 = arith.truncf %26 : vector<16x128xf32> to vector<16x128xbf16>
    %c0_18 = arith.constant 0 : index
    %c0_19 = arith.constant 0 : index
    %28 = vector.load %arg8[%c0_18, %c0_19] : memref<128x64xbf16, #tpu.memory_space<vmem>>, vector<128x64xbf16>
    %cst_20 = arith.constant dense<0.000000e+00> : vector<16x64xf32>
    %29 = tpu.matmul %27, %28, %cst_20 {dimension_numbers = #tpu.dot_dimension_numbers<[1], [0], [0], [1], [0, 0, 1, 1], [], []>} : vector<16x128xbf16>, vector<128x64xbf16>, vector<16x64xf32> -> vector<16x64xf32>
    %c0_21 = arith.constant 0 : index
    %c0_22 = arith.constant 0 : index
    %30 = vector.load %arg9[%c0_21, %c0_22] : memref<1x64xf32, #tpu.memory_space<vmem>>, vector<1x64xf32>
    %31 = vector.broadcast %30 : vector<1x64xf32> to vector<16x64xf32>
    %32 = arith.addf %29, %31 : vector<16x64xf32>
    %33 = arith.mulf %32, %32 : vector<16x64xf32>
    %cst_23 = arith.constant dense<0.000000e+00> : vector<16xf32>
    %34 = vector.multi_reduction <add>, %33, %cst_23 [1] : vector<16x64xf32> to vector<16xf32>
    %35 = vector.shape_cast %34 : vector<16xf32> to vector<16x1xf32>
    %cst_24 = arith.constant 9.99999996E-13 : f32
    %36 = vector.broadcast %cst_24 : f32 to vector<16x1xf32>
    %37 = arith.addf %35, %36 : vector<16x1xf32>
    %38 = math.rsqrt %37 : vector<16x1xf32>
    %39 = vector.broadcast %38 : vector<16x1xf32> to vector<16x64xf32>
    %40 = arith.mulf %32, %39 : vector<16x64xf32>
    %c0_25 = arith.constant 0 : index
    %c0_26 = arith.constant 0 : index
    %41 = vector.load %arg10[%c0_25, %c0_26] : memref<16x64xf32, #tpu.memory_space<vmem>>, vector<16x64xf32>
    tpu.vector_store %arg10[%c0_25, %c0_26], %40 {strides = array<i32>} : memref<16x64xf32, #tpu.memory_space<vmem>>, vector<16x64xf32>,
    return
  }
  func.func @transform_0(%arg0: i32) -> (i32, i32) {
    %c0_i32 = arith.constant 0 : i32
    %c0_i32_0 = arith.constant 0 : i32
    return %arg0, %c0_i32 : i32, i32
  }
  func.func @transform_1(%arg0: i32) -> (i32, i32) {
    %c0_i32 = arith.constant 0 : i32
    %c0_i32_0 = arith.constant 0 : i32
    %c0_i32_1 = arith.constant 0 : i32
    return %c0_i32, %c0_i32_0 : i32, i32
  }
  func.func @transform_2(%arg0: i32) -> (i32, i32) {
    %c0_i32 = arith.constant 0 : i32
    %c0_i32_0 = arith.constant 0 : i32
    %c0_i32_1 = arith.constant 0 : i32
    return %c0_i32, %c0_i32_0 : i32, i32
  }
  func.func @transform_3(%arg0: i32) -> (i32, i32) {
    %c0_i32 = arith.constant 0 : i32
    %c0_i32_0 = arith.constant 0 : i32
    %c0_i32_1 = arith.constant 0 : i32
    return %c0_i32, %c0_i32_0 : i32, i32
  }
  func.func @transform_4(%arg0: i32) -> (i32, i32) {
    %c0_i32 = arith.constant 0 : i32
    %c0_i32_0 = arith.constant 0 : i32
    %c0_i32_1 = arith.constant 0 : i32
    return %c0_i32, %c0_i32_0 : i32, i32
  }
  func.func @transform_5(%arg0: i32) -> (i32, i32) {
    %c0_i32 = arith.constant 0 : i32
    %c0_i32_0 = arith.constant 0 : i32
    %c0_i32_1 = arith.constant 0 : i32
    return %c0_i32, %c0_i32_0 : i32, i32
  }
  func.func @transform_6(%arg0: i32) -> (i32, i32) {
    %c0_i32 = arith.constant 0 : i32
    %c0_i32_0 = arith.constant 0 : i32
    %c0_i32_1 = arith.constant 0 : i32
    return %c0_i32, %c0_i32_0 : i32, i32
  }
  func.func @transform_7(%arg0: i32) -> (i32, i32) {
    %c0_i32 = arith.constant 0 : i32
    %c0_i32_0 = arith.constant 0 : i32
    %c0_i32_1 = arith.constant 0 : i32
    return %c0_i32, %c0_i32_0 : i32, i32
  }
  func.func @transform_8(%arg0: i32) -> (i32, i32) {
    %c0_i32 = arith.constant 0 : i32
    %c0_i32_0 = arith.constant 0 : i32
    %c0_i32_1 = arith.constant 0 : i32
    return %c0_i32, %c0_i32_0 : i32, i32
  }
  func.func @transform_9(%arg0: i32) -> (i32, i32) {
    %c0_i32 = arith.constant 0 : i32
    %c0_i32_0 = arith.constant 0 : i32
    return %arg0, %c0_i32 : i32, i32
  }
}

</mosaic_0001>

<bundles_post_ra>
// kernel: mlp_encoder_text_alt.1
= control target key start
LH: loop header
LB: loop body
LE: loop exit
PB: predicated region body
PF: predicated region fallthrough
CT: control target
= control target key end

     0   :  { %v829_v1 = vmov 0   ;;  %v830_v34 = vmov 0.0   ;;  %v53_v40 = vlaneseq  ;;  %vm831_vm0 = vmmov 0   ;;  %s1069_s1 = inlined_call_operand.vmem [shape: bf16[128,256], index: 1, kind: input, shape index: {}]   ;;  %s1070_s0 = inlined_call_operand.vmem [shape: bf16[16,128], index: 0, kind: input, shape index: {}]   ;;  %s1071_s3 = inlined_call_operand.vmem [shape: bf16[256,128], index: 3, kind: input, shape index: {}]   ;;  %s1072_s5 = inlined_call_operand.vmem [shape: bf16[128,128], index: 5, kind: input, shape index: {}]   ;;  %s1073_s2 = inlined_call_operand.vmem [shape: f32[1,256], index: 2, kind: input, shape index: {}]   ;;  %s1074_s7 = inlined_call_operand.vmem [shape: bf16[128,64], index: 7, kind: input, shape index: {}]   ;;  %s1075_s4 = inlined_call_operand.vmem [shape: f32[1,128], index: 4, kind: input, shape index: {}]   ;;  %s1076_s6 = inlined_call_operand.vmem [shape: f32[1,128], index: 6, kind: input, shape index: {}]   ;;  %s1077_s8 = inlined_call_operand.vmem [shape: f32[1,64], index: 8, kind: input, shape index: {}]   ;;  %s1078_s9 = inlined_call_operand.vmem [shape: f32[16,64], index: 9, kind: output, shape index: {}]  }
   0x1   :  { %v768_v0 = vld [vmem:[%s1069_s1 + $0x4] ss:$8 sps:$4 sm:$0xff]   ;;  %181 = vmatprep.mubr.bf16.mxu0 %v829_v1  ;;  %v770_v2 = vld [vmem:[%s1069_s1] ss:$8 sps:$4 sm:$0xff]   ;;  %v771_v3 = vld [vmem:[%s1069_s1 + $0x14] ss:$8 sps:$4 sm:$0xff]  }
   0x2   :  { %149 = vmatprep.subr.bf16.mxu0 %v768_v0  ;;  %v773_v4 = vld [vmem:[%s1069_s1 + $0x10] ss:$8 sps:$4 sm:$0xff]   ;;  %v774_v5 = vld [vmem:[%s1069_s1 + $0x24] ss:$8 sps:$4 sm:$0xff]   ;;  %v776_v6 = vld [vmem:[%s1069_s1 + $0x20] ss:$8 sps:$4 sm:$0xff]  }
   0x3   :  { %150 = vmatpush1.bf16.msra.mxu0 %v770_v2  ;;  %v777_v7 = vld [vmem:[%s1069_s1 + $0x34] ss:$8 sps:$4 sm:$0xff]   ;;  %v779_v8 = vld [vmem:[%s1069_s1 + $0x30] ss:$8 sps:$4 sm:$0xff]   ;;  %v780_v9 = vld [vmem:[%s1069_s1 + $0x44] ss:$8 sps:$4 sm:$0xff]  }
   0x4   :  { %151 = vmatprep.subr.bf16.mxu0 %v771_v3  ;;  %v793_v10 = vld [vmem:[%s1071_s3 + $0x40] sm:$0xff]   ;;  %v783_v13 = vld [vmem:[%s1069_s1 + $0x54] ss:$8 sps:$4 sm:$0xff]   ;;  %v795_v14 = vld [vmem:[%s1071_s3 + $0x48] sm:$0xff]   ;;  %v54_v41 = vshrl.u32 %v53_v40, 7  ;;  %vm614_vm1 = vcmask 523264  }
   0x5   :  { %v782_v11 = vld [vmem:[%s1069_s1 + $0x40] ss:$8 sps:$4 sm:$0xff]   ;;  %685 = vmatprep.subr.bf16.mxu1 %v793_v10  ;;  %v797_v16 = vld [vmem:[%s1071_s3 + $0x50] sm:$0xff]   ;;  %v786_v18 = vld [vmem:[%s1069_s1 + $0x64] ss:$8 sps:$4 sm:$0xff]  }
   0x6   :  { %v794_v12 = vld [vmem:[%s1071_s3] sm:$0xff]   ;;  %v796_v15 = vld [vmem:[%s1071_s3 + $0x8] sm:$0xff]   ;;  %v785_v17 = vld [vmem:[%s1069_s1 + $0x50] ss:$8 sps:$4 sm:$0xff]   ;;  %v55_v42 = vsub.s32 0, %v54_v41  ;;  %v59_v44 = vsub.s32 1, %v54_v41 }
   0x7   :  { %152 = vmatpush1.bf16.msra.mxu0 %v773_v4  ;;  %686 = vmatpush3.bf16.msra.mxu1 %v794_v12  ;;  %v798_v19 = vld [vmem:[%s1071_s3 + $0x10] sm:$0xff]   ;;  %v799_v20 = vld [vmem:[%s1071_s3 + $0x58] sm:$0xff]   ;;  %v788_v21 = vld [vmem:[%s1069_s1 + $0x60] ss:$8 sps:$4 sm:$0xff]  }
   0x8   :  { %153 = vmatprep.subr.bf16.mxu0 %v774_v5  ;;  %687 = vmatprep.subr.bf16.mxu1 %v795_v14  ;;  %v800_v22 = vld [vmem:[%s1071_s3 + $0x18] sm:$0xff]   ;;  %v801_v24 = vld [vmem:[%s1071_s3 + $0x60] sm:$0xff]   ;;  %v803_v28 = vld [vmem:[%s1071_s3 + $0x68] sm:$0xff]  }
   0x9   :  { %v789_v23 = vld [vmem:[%s1069_s1 + $0x74] ss:$8 sps:$4 sm:$0xff]   ;;  %v791_v25 = vld [vmem:[%s1069_s1 + $0x70] ss:$8 sps:$4 sm:$0xff]   ;;  %v802_v26 = vld [vmem:[%s1071_s3 + $0x20] sm:$0xff]  }
   0xa   :  { %v792_v27 = vld [vmem:[%s1070_s0] sm:$0xff]   ;;  %v804_v29 = vld [vmem:[%s1071_s3 + $0x28] sm:$0xff]   ;;  %v805_v30 = vld [vmem:[%s1071_s3 + $0x70] sm:$0xff]  }
   0xb   :  { %154 = vmatpush1.bf16.msra.mxu0 %v776_v6  ;;  %688 = vmatpush3.bf16.msra.mxu1 %v796_v15  ;;  %v806_v31 = vld [vmem:[%s1071_s3 + $0x30] sm:$0xff]   ;;  %v807_v32 = vld [vmem:[%s1071_s3 + $0x78] sm:$0xff]   ;;  %v809_v35 = vld [vmem:[%s1072_s5] sm:$0xff]  }
   0xc   :  { %155 = vmatprep.subr.bf16.mxu0 %v777_v7  ;;  %689 = vmatprep.subr.bf16.mxu1 %v797_v16  ;;  %v808_v33 = vld [vmem:[%s1071_s3 + $0x38] sm:$0xff]   ;;  %v810_v36 = vld [vmem:[%s1072_s5 + $0x8] sm:$0xff]   ;;  %v811_v37 = vld [vmem:[%s1072_s5 + $0x10] sm:$0xff]  }
   0xd   :  { %v812_v38 = vld [vmem:[%s1072_s5 + $0x18] sm:$0xff]   ;;  %v813_v39 = vld [vmem:[%s1072_s5 + $0x20] sm:$0xff]   ;;  %v814_v1 = vld [vmem:[%s1072_s5 + $0x28] sm:$0xff]  }
   0xe   :  { %v51_v43 = vld [vmem:[%s1073_s2] sm:$0x3]  ;;  %v815_v2 = vld [vmem:[%s1072_s5 + $0x30] sm:$0xff]   ;;  %v816_v3 = vld [vmem:[%s1072_s5 + $0x38] sm:$0xff]  }
   0xf   :  { %156 = vmatpush1.bf16.msra.mxu0 %v779_v8  ;;  %690 = vmatpush3.bf16.msra.mxu1 %v798_v19  ;;  %v56_v45 = vrot.slane %v51_v43, %v55_v42  ;;  %v60_v46 = vrot.slane %v51_v43, %v59_v44  ;;  %v817_v4 = vld [vmem:[%s1074_s7] sm:$0xff]   ;;  %v818_v5 = vld [vmem:[%s1074_s7 + $0x8] sm:$0xff]   ;;  %v819_v6 = vld [vmem:[%s1074_s7 + $0x10] sm:$0xff]  }
  0x10   :  { %157 = vmatprep.subr.bf16.mxu0 %v780_v9  ;;  %691 = vmatprep.subr.bf16.mxu1 %v799_v20  ;;  %v820_v7 = vld [vmem:[%s1074_s7 + $0x18] sm:$0xff]   ;;  %v821_v8 = vld [vmem:[%s1074_s7 + $0x20] sm:$0xff]  }
  0x11   :  { %v650_v10 = vld [vmem:[%s1075_s4] ss:$0 sm:$0xff] }
  0x13   :  { %158 = vmatpush1.bf16.msra.mxu0 %v782_v11  ;;  %692 = vmatpush3.bf16.msra.mxu1 %v800_v22 }
  0x14   :  { %159 = vmatprep.subr.bf16.mxu0 %v783_v13  ;;  %693 = vmatprep.subr.bf16.mxu1 %v801_v24  ;;  %v823_v24 = vld [vmem:[%s1074_s7 + $0x30] sm:$0xff]  }
  0x17   :  { %160 = vmatpush1.bf16.msra.mxu0 %v785_v17  ;;  %694 = vmatpush3.bf16.msra.mxu1 %v802_v26  ;;  %v667_v26 = vld [vmem:[%s1076_s6] ss:$0 sm:$0xff] }
  0x18   :  { %161 = vmatprep.subr.bf16.mxu0 %v786_v18  ;;  %695 = vmatprep.subr.bf16.mxu1 %v803_v28 }
  0x1b   :  { %162 = vmatpush1.bf16.msra.mxu0 %v788_v21  ;;  %696 = vmatpush3.bf16.msra.mxu1 %v804_v29 }
  0x1c   :  { %163 = vmatprep.subr.bf16.mxu0 %v789_v23  ;;  %697 = vmatprep.subr.bf16.mxu1 %v805_v30  ;;  %v822_v23 = vld [vmem:[%s1074_s7 + $0x28] sm:$0xff]  }
  0x1f   :  { %164 = vmatpush1.bf16.msra.mxu0 %v791_v25  ;;  %698 = vmatpush3.bf16.msra.mxu1 %v806_v31  ;;  %v824_v25 = vld [vmem:[%s1074_s7 + $0x38] sm:$0xff]  }
  0x20   :  { %699 = vmatprep.subr.bf16.mxu1 %v807_v32  ;;  %725 = vmatprep.subr.bf16.mxu0 %v830_v34 }
  0x22   :  { %182 = vmatmul.mubr.bf16.vlgmr.msra.gmra.mrb[0].mxu0 %v792_v27 }
  0x23   :  { %700 = vmatpush3.bf16.msra.mxu1 %v808_v33  ;;  %726 = vmatpush3.bf16.msra.mxu0 %v809_v35 }
  0x24   :  { %745 = vmatprep.subr.bf16.mxu1 %v830_v34  ;;  %727 = vmatprep.subr.bf16.mxu0 %v830_v34 }
  0x25   :  { %741 = vmatprep.mubr.msk.bf16.mxu0 %vm831_vm0, %v830_v34 }
  0x27   :  { %728 = vmatpush3.bf16.msra.mxu0 %v810_v36 }
  0x28   :  { %729 = vmatprep.subr.bf16.mxu0 %v830_v34 }
  0x2b   :  { %730 = vmatpush3.bf16.msra.mxu0 %v811_v37 }
  0x2c   :  { %731 = vmatprep.subr.bf16.mxu0 %v830_v34 }
  0x2f   :  { %732 = vmatpush3.bf16.msra.mxu0 %v812_v38  ;;  %v676_v38 = vld [vmem:[%s1077_s8] ss:$0 sm:$0xff] }
  0x30   :  { %733 = vmatprep.subr.bf16.mxu0 %v830_v34 }
  0x33   :  { %734 = vmatpush3.bf16.msra.mxu0 %v813_v39 }
  0x34   :  { %735 = vmatprep.subr.bf16.mxu0 %v830_v34 }
  0x37   :  { %736 = vmatpush3.bf16.msra.mxu0 %v814_v1 }
  0x38   :  { %737 = vmatprep.subr.bf16.mxu0 %v830_v34 }
  0x3b   :  { %738 = vmatpush3.bf16.msra.mxu0 %v815_v2 }
  0x3c   :  { %739 = vmatprep.subr.bf16.mxu0 %v830_v34 }
  0x3f   :  { %740 = vmatpush3.bf16.msra.mxu0 %v816_v3 }
  0xf5   :  { %v183_v47 = vpop.f32.mrb[0].mxu0 }
  0xf6   :  { %v184_v48 = vadd.f32 %v183_v47, %v56_v45  ;;  %v185_v49 = vpop.f32.mrb[1].mxu0 }
  0xf7   :  { %v186_v50 = vadd.f32 %v185_v49, %v60_v46  ;;  %v187_v51 = vpop.f32.mrb[2].mxu0 }
  0xf8   :  { %v192_v52 = vmul.f32 0.1, %v184_v48  ;;  %v188_v53 = vadd.f32 %v187_v51, %v56_v45  ;;  %v189_v54 = vpop.f32.mrb[3].mxu0 }
  0xf9   :  { %v193_v55 = vmul.f32 0.1, %v186_v50  ;;  %v190_v56 = vadd.f32 %v189_v54, %v60_v46 }
  0xfa   :  { %v194_v57 = vmul.f32 0.1, %v188_v53  ;;  %v196_v59 = vmax.f32 %v184_v48, %v192_v52 }
  0xfb   :  { %v195_v58 = vmul.f32 0.1, %v190_v56  ;;  %v197_v61 = vmax.f32 %v186_v50, %v193_v55 }
  0xfc   :  { %v198_v60 = vmax.f32 %v188_v53, %v194_v57 }
  0xfd   :  { %v199_v62 = vmax.f32 %v190_v56, %v195_v58 }
  0xfe   :  { %v200_v63 = vpack.c.bf16 %v198_v60, %v196_v59 }
  0xff   :  { %v201_v0 = vpack.c.bf16 %v199_v62, %v197_v61 }
 0x101   :  { %369 = vmatprep.mubr.bf16.mxu1 %v201_v0 }
 0x102   :  { %370 = vmatmul.mubr.bf16.vlgmr.msra.gmra.mrb[0].mxu1 %v200_v63 }
 0x103   :  { %761 = vmatprep.mubr.msk.bf16.mxu1 %vm831_vm0, %v830_v34  ;;  %746 = vmatpush3.bf16.msra.mxu1 %v817_v4 }
 0x104   :  { %747 = vmatprep.subr.bf16.mxu1 %v830_v34 }
 0x107   :  { %748 = vmatpush3.bf16.msra.mxu1 %v818_v5 }
 0x108   :  { %749 = vmatprep.subr.bf16.mxu1 %v830_v34 }
 0x10b   :  { %750 = vmatpush3.bf16.msra.mxu1 %v819_v6 }
 0x10c   :  { %751 = vmatprep.subr.bf16.mxu1 %v830_v34 }
 0x10f   :  { %752 = vmatpush3.bf16.msra.mxu1 %v820_v7 }
 0x110   :  { %753 = vmatprep.subr.bf16.mxu1 %v830_v34 }
 0x113   :  { %754 = vmatpush3.bf16.msra.mxu1 %v821_v8 }
 0x114   :  { %755 = vmatprep.subr.bf16.mxu1 %v830_v34 }
 0x117   :  { %756 = vmatpush3.bf16.msra.mxu1 %v822_v23 }
 0x118   :  { %757 = vmatprep.subr.bf16.mxu1 %v830_v34 }
 0x11b   :  { %758 = vmatpush3.bf16.msra.mxu1 %v823_v24 }
 0x11c   :  { %759 = vmatprep.subr.bf16.mxu1 %v830_v34 }
 0x11f   :  { %760 = vmatpush3.bf16.msra.mxu1 %v824_v25 }
 0x1d5   :  { %v701_v9 = vpop.f32.mrb[0].mxu1 }
 0x1d6   :  { %v702_v11 = vpop.f32.mrb[1].mxu1 }
 0x1d7   :  { %v703_v12 = vadd.f32 %v702_v11, %v701_v9  ;;  %v704_v13 = vpop.f32.mrb[2].mxu1 }
 0x1d8   :  { %v705_v14 = vpop.f32.mrb[3].mxu1 }
 0x1d9   :  { %v372_v15 = vadd.f32 %v703_v12, %v650_v10  ;;  %v706_v16 = vadd.f32 %v705_v14, %v704_v13 }
 0x1db   :  { %v378_v17 = vmul.f32 0.1, %v372_v15  ;;  %v375_v18 = vadd.f32 %v706_v16, %v650_v10 }
 0x1dd   :  { %v379_v19 = vmul.f32 0.1, %v375_v18  ;;  %v380_v20 = vmax.f32 %v372_v15, %v378_v17 }
 0x1df   :  { %v381_v21 = vmax.f32 %v375_v18, %v379_v19 }
 0x1e1   :  { %v382_v22 = vpack.c.bf16 %v381_v21, %v380_v20 }
 0x1e3   :  { %742 = vmatmul.mubr.bf16.vlgmr.msra.gmra.mrb[4].mxu0 %v382_v22 }
 0x2b6   :  { %v488_v27 = vpop.f32.mrb[4].mxu0 }
 0x2b7   :  { %v489_v28 = vadd.f32 %v667_v26, %v488_v27  ;;  %v743_v29 = vpop.f32.mrb[5].mxu0 }
 0x2b8   :  { %v491_v30 = vpop.f32.mrb[6].mxu0 }
 0x2b9   :  { %v495_v31 = vmul.f32 0.1, %v489_v28  ;;  %v492_v32 = vadd.f32 %v667_v26, %v491_v30  ;;  %v744_v33 = vpop.f32.mrb[7].mxu0 }
 0x2bb   :  { %v496_v35 = vmul.f32 0.1, %v492_v32  ;;  %v497_v36 = vmax.f32 %v489_v28, %v495_v31 }
 0x2bd   :  { %v498_v37 = vmax.f32 %v492_v32, %v496_v35 }
 0x2bf   :  { %v499_v34 = vpack.c.bf16 %v498_v37, %v497_v36 }
 0x2c1   :  { %762 = vmatmul.mubr.bf16.vlgmr.msra.gmra.mrb[4].mxu1 %v499_v34 }
 0x394   :  { %v605_v39 = vpop.f32.mrb[4].mxu1 }
 0x395   :  { %v606_v40 = vadd.f32 %v676_v38, %v605_v39  ;;  %v763_v41 = vpop.f32.mrb[5].mxu1 }
 0x396   :  { %v608_v42 = vpop.f32.mrb[6].mxu1 }
 0x397   :  { %v609_v43 = vadd.f32 %v676_v38, %v608_v42  ;;  %v764_v44 = vpop.f32.mrb[7].mxu1  ;;  %v612_v45 = vmul.f32 %v606_v40, %v606_v40 }
 0x399   :  { %v615_v46 = vsel %vm614_vm1, %v612_v45, 0.0  ;;  %v613_v47 = vmul.f32 %v609_v43, %v609_v43 }
 0x39a   :  { %616 = vadd.xlane.f32.xlu0 %v615_v46 }
 0x39b   :  { %v618_v48 = vsel %vm614_vm1, %v613_v47, 0.0 }
 0x39e   :  { %619 = vadd.xlane.f32.xlu0 %v618_v48 }
 0x427   :  { %v617_v49 = vpop.xlane.xlu0 %616 }
 0x428   :  { %v621_v50 = vadd.f32 1e-12, %v617_v49 }
 0x42a   :  { %825 = vrsqrt.f32 %v621_v50 }
 0x42b   :  { %v620_v51 = vpop.xlane.xlu0 %619 }
 0x42c   :  { %v622_v52 = vadd.f32 1e-12, %v620_v51 }
 0x42e   :  { %827 = vrsqrt.f32 %v622_v52 }
 0x434   :  { %v826_v53 = vpop.eup %825 }
 0x435   :  { %v625_v54 = vmul.f32 %v826_v53, %v606_v40 }
 0x437   :  { %627 = vst.msk [vmem:[%s1078_s9] sm:$0xff] %vm614_vm1, %v625_v54 }
 0x438   :  { %v828_v55 = vpop.eup %827 }
 0x439   :  { %v626_v56 = vmul.f32 %v828_v55, %v609_v43 }
 0x43b   :  { %628 = vst.msk [vmem:[%s1078_s9 + $0x8] sm:$0xff] %vm614_vm1, %v626_v56 }

</bundles_post_ra>
